<compile_context>
chip_gen: v7x
topology: tpu7x:2x2x1
jax: 0.10.0
libtpu: 0.0.40
codegen_flags: <defaults>
</compile_context>

<pallas_src>
import re
from typing import NamedTuple

import jax
import jax.numpy as jnp
from jax import lax
from jax.experimental import pallas as pl
from jax.experimental.pallas import tpu as pltpu

NEG_SLOPE = 0.01  # PyTorch nn.LeakyReLU() default


def _leaky_relu(x):
    # elementwise math kept in f32 (v5e VPU has no bf16)
    return jnp.where(x >= 0, x, NEG_SLOPE * x)


def _round_up(a, b):
    return -(-a // b) * b


def _tpu_generation(default=6):
    """Best-effort TPU generation (5 = v5e, 6 = v6e, 7 = v7x)."""
    try:
        kind = jax.devices()[0].device_kind.lower()
    except Exception:
        return default
    if "tpu" not in kind:
        return default
    m = re.search(r"(\d+)", kind)
    return int(m.group(1)) if m else default


def _segment_length(L):
    """Padded per-batch segment length.

    For L < 128: smallest power of two >= L (divides 128, so several segments
    pack densely into each 128-lane group).  For long L: next multiple of 128.
    """
    if L >= 128:
        return _round_up(L, 128)
    Ls = 1
    while Ls < L:
        Ls *= 2
    return Ls


class _Plan(NamedTuple):
    B: int
    C: int
    L: int
    Ls: int                # padded segment length (lane axis per batch element)
    n_seg: int             # B padded with zero segments to a block multiple
    segs_per_block: int
    fuse: bool             # single (3C, C) matmul vs three (C, C) matmuls
    compute_dtype: object  # matmul operand dtype
    vmem_limit: int


def _make_plan(B, C, L, act_bytes=4):
    gen = _tpu_generation()
    Ls = _segment_length(L)
    # Block lanes must be a multiple of 128 and contain only whole segments.
    min_segs = max(1, 128 // Ls)
    seg_bytes = C * Ls * act_bytes
    # Nominal per-block activation budget. The kernel keeps several block-sized
    # f32 temporaries live plus double-buffered in/out blocks, so the effective
    # footprint is ~6-8x this; v7x (64 MiB VMEM) gets a smaller budget.
    budget = (3 << 20) if gen >= 7 else (6 << 20)
    segs = max(min_segs, (budget // max(1, seg_bytes)) // min_segs * min_segs)
    segs = min(segs, _round_up(B, min_segs))
    if gen >= 7:
        # Keep >= 2 grid steps so the "parallel" axis shards over both TCs.
        while segs > min_segs and _round_up(B, segs) // segs < 2:
            segs = max(min_segs, (segs // 2) // min_segs * min_segs)
    n_seg = _round_up(B, segs)
    fuse = 3 * C <= (256 if gen >= 6 else 128)          # v6e/v7x MXU is 256-wide
    compute_dtype = jnp.bfloat16 if C >= 128 else jnp.float32
    vmem_limit = (48 << 20) if gen >= 7 else (64 << 20)
    return _Plan(B, C, L, Ls, n_seg, segs, fuse, compute_dtype, vmem_limit)


def _make_resblock_kernel(C, L, Ls, fuse, compute_dtype):
    """x_ref / o_ref: (C, segs_per_block * Ls) lane-folded activations.
    w_ref: (2, 3C, C) if fuse else (2, 3, C, C)."""

    def kernel(x_ref, w_ref, o_ref):
        x32 = x_ref[...].astype(jnp.float32)                   # (C, lanes)
        lane = lax.broadcasted_iota(jnp.int32, x32.shape, 1) % Ls
        seg_first = lane == 0
        seg_last = lane == (Ls - 1)

        # Lane shifts are segment-local: roll within the block, zero the
        # wrapped-in column at segment boundaries (block edges are always
        # segment boundaries because blocks hold whole segments).
        def shift_r(v):   # out[:, l] = v[:, l-1]
            return jnp.where(seg_first, 0.0, jnp.roll(v, 1, axis=1))

        def shift_l(v):   # out[:, l] = v[:, l+1]
            return jnp.where(seg_last, 0.0, jnp.roll(v, -1, axis=1))

        def conv(v32, idx):
            v = v32.astype(compute_dtype)
            if fuse:
                # One MXU matmul on the unshifted input; shift the output rows
                # (dot over channels commutes with lane rolls / lane masks).
                y = jnp.dot(w_ref[idx], v, preferred_element_type=jnp.float32)
                y0, y1, y2 = y[:C], y[C:2 * C], y[2 * C:]
            else:
                y0 = jnp.dot(w_ref[idx, 0], v, preferred_element_type=jnp.float32)
                y1 = jnp.dot(w_ref[idx, 1], v, preferred_element_type=jnp.float32)
                y2 = jnp.dot(w_ref[idx, 2], v, preferred_element_type=jnp.float32)
            return shift_r(y0) + y1 + shift_l(y2)

        h = _leaky_relu(conv(x32, 0))
        if Ls > L:
            # zero intra-segment padding columns so conv2's taps never read them
            h = jnp.where(lane < L, h, 0.0)
        h = _leaky_relu(conv(h, 1))
        out = x32 + h                                           # residual in f32
        if Ls > L:
            # keep padding columns zero so folded outputs can be chained
            out = jnp.where(lane < L, out, 0.0)
        o_ref[...] = out.astype(o_ref.dtype)

    return kernel


def _prep_weights(w1, w2, C, fuse, dtype):
    if fuse:
        # (C_out, C_in, 3) -> (3*C_out, C_in); rows [k*C:(k+1)*C] hold tap k
        def prep(w):
            return jnp.transpose(w, (2, 0, 1)).reshape(3 * C, C)
    else:
        # (C_out, C_in, 3) -> (3, C_out, C_in)
        def prep(w):
            return jnp.transpose(w, (2, 0, 1))
    return jnp.stack([prep(w1), prep(w2)]).astype(dtype)


def fold_activations(x, plan):
    """(B, C, L) -> lane-folded (C, n_seg * Ls), zero-padded segments/tails."""
    B, C, L = x.shape
    x = jnp.pad(x, ((0, plan.n_seg - B), (0, 0), (0, plan.Ls - L)))
    return jnp.transpose(x, (1, 0, 2)).reshape(C, plan.n_seg * plan.Ls)


def unfold_activations(y, plan):
    """Lane-folded (C, n_seg * Ls) -> (B, C, L)."""
    C = y.shape[0]
    y = y.reshape(C, plan.n_seg, plan.Ls)[:, :plan.B, :plan.L]
    return jnp.transpose(y, (1, 0, 2))


def _resblock_folded(x_lanes, w1, w2, plan):
    C, lanes = x_lanes.shape
    lanes_per_block = plan.segs_per_block * plan.Ls
    grid = (lanes // lanes_per_block,)
    w_stk = _prep_weights(w1, w2, C, plan.fuse, plan.compute_dtype)
    kernel = _make_resblock_kernel(C, plan.L, plan.Ls, plan.fuse,
                                   plan.compute_dtype)
    nwd = w_stk.ndim
    return pl.pallas_call(
        kernel,
        out_shape=jax.ShapeDtypeStruct(x_lanes.shape, x_lanes.dtype),
        grid_spec=pltpu.PrefetchScalarGridSpec(
            num_scalar_prefetch=0,
            grid=grid,
            in_specs=[
                pl.BlockSpec((C, lanes_per_block), lambda i: (0, i)),
                pl.BlockSpec(w_stk.shape, lambda i: (0,) * nwd),  # resident weights
            ],
            out_specs=pl.BlockSpec((C, lanes_per_block), lambda i: (0, i)),
        ),
        compiler_params=pltpu.CompilerParams(
            dimension_semantics=("parallel",),
            vmem_limit_bytes=plan.vmem_limit,
        ),
    )(x_lanes, w_stk)


def resblock_chain(x, blocks):
    """Apply a sequence of ResBlocks; activations stay in the lane-folded
    layout between blocks (one fold + one unfold for the whole stack)."""
    B, C, L = x.shape
    plan = _make_plan(B, C, L, act_bytes=jnp.dtype(x.dtype).itemsize)
    xl = fold_activations(x, plan)
    for w1, w2 in blocks:
        xl = _resblock_folded(xl, w1, w2, plan)
    return unfold_activations(xl, plan)


def resblock(x, w1, w2):
    """x: (B, C, L); w1, w2: (C, C, 3) PyTorch Conv1d weights (bias-free)."""
    return resblock_chain(x, [(w1, w2)])


def resblock_ref(x, w1, w2):
    """Pure-JAX reference matching the PyTorch ResBlock forward."""
    dn = lax.conv_dimension_numbers(x.shape, w1.shape, ("NCW", "OIW", "NCW"))

    def conv(v, w):
        return lax.conv_general_dilated(
            v, w, window_strides=(1,), padding=((1, 1),),
            dimension_numbers=dn, precision=lax.Precision.HIGHEST)

    h = _leaky_relu(conv(x, w1))
    h = _leaky_relu(conv(h, w2))
    return x + h


if __name__ == "__main__":
    key = jax.random.PRNGKey(0)
    keys = jax.random.split(key, 9)

    # 1) ResBlock(n=8), B=2, L=16: fused single-matmul path, exact lane packing.
    B, C, L = 2, 8, 16
    x = jax.random.normal(keys[0], (B, C, L), dtype=jnp.float32)
    w1 = jax.random.normal(keys[1], (C, C, 3), dtype=jnp.float32) * 0.1
    w2 = jax.random.normal(keys[2], (C, C, 3), dtype=jnp.float32) * 0.1
    out = jax.block_until_ready(resblock(x, w1, w2))
    ref = resblock_ref(x, w1, w2)
    assert out.shape == (B, C, L)
    assert jnp.allclose(out, ref, atol=1e-4, rtol=1e-4), "mismatch (C=8)"

    # 2) Larger C: fused (3C<=256) on v6e/v7x, 3-matmul path on v5e.
    C2 = 48
    x2 = jax.random.normal(keys[3], (B, C2, L), dtype=jnp.float32)
    w1b = jax.random.normal(keys[4], (C2, C2, 3), dtype=jnp.float32) * 0.1
    w2b = jax.random.normal(keys[5], (C2, C2, 3), dtype=jnp.float32) * 0.1
    out2 = jax.block_until_ready(resblock(x2, w1b, w2b))
    ref2 = resblock_ref(x2, w1b, w2b)
    assert jnp.allclose(out2, ref2, atol=1e-4, rtol=1e-4), "mismatch (C=48)"

    # 3) Chained blocks in folded layout, odd B / L (segment + batch padding).
    B3, C3, L3 = 3, 8, 20
    x3 = jax.random.normal(keys[6], (B3, C3, L3), dtype=jnp.float32)
    w1c = jax.random.normal(keys[7], (C3, C3, 3), dtype=jnp.float32) * 0.1
    w2c = jax.random.normal(keys[8], (C3, C3, 3), dtype=jnp.float32) * 0.1
    out3 = jax.block_until_ready(resblock_chain(x3, [(w1c, w2c), (w2c, w1c)]))
    ref3 = resblock_ref(resblock_ref(x3, w1c, w2c), w2c, w1c)
    assert out3.shape == (B3, C3, L3)
    assert jnp.allclose(out3, ref3, atol=1e-4, rtol=1e-4), "mismatch (chain)"

    print("KERNEL_OK")
</pallas_src>

<mosaic_0001>
module attributes {stable_mosaic.version = 11 : i64} {
  func.func @kernel(%arg0: i32, %arg1: memref<8x128xf32, #tpu.memory_space<vmem>>, %arg2: memref<2x24x8xf32, #tpu.memory_space<vmem>>, %arg3: memref<8x128xf32, #tpu.memory_space<vmem>>) attributes {dimension_semantics = [#tpu.dimension_semantics<parallel>], iteration_bounds = array<i64: 1>, scalar_prefetch = 0 : i64, scratch_operands = 0 : i64, tpu.core_type = #tpu.core_type<tc>, window_params = [{transform_indices = @transform_0, window_bounds = array<i64: 8, 128>}, {pipeline_mode = #tpu.pipeline_mode<synchronous>, transform_indices = @transform_1, window_bounds = array<i64: 2, 24, 8>}, {transform_indices = @transform_2, window_bounds = array<i64: 8, 128>}]} {
    %c0 = arith.constant 0 : index
    %c0_0 = arith.constant 0 : index
    %0 = vector.load %arg1[%c0, %c0_0] : memref<8x128xf32, #tpu.memory_space<vmem>>, vector<8x128xf32>
    %1 = tpu.iota {dimensions = array<i32: 1>} : vector<8x128xi32>
    %c16_i32 = arith.constant 16 : i32
    %c0_i32 = arith.constant 0 : i32
    %2 = arith.cmpi eq, %c16_i32, %c0_i32 : i32
    %c1_i32 = arith.constant 1 : i32
    %3 = arith.select %2, %c1_i32, %c16_i32 : i32
    %4 = vector.broadcast %3 : i32 to vector<8x128xi32>
    %5 = arith.remsi %1, %4 : vector<8x128xi32>
    %c0_i32_1 = arith.constant 0 : i32
    %6 = vector.broadcast %c0_i32_1 : i32 to vector<8x128xi32>
    %7 = arith.cmpi ne, %5, %6 : vector<8x128xi32>
    %c0_i32_2 = arith.constant 0 : i32
    %8 = vector.broadcast %c0_i32_2 : i32 to vector<8x128xi32>
    %9 = arith.cmpi slt, %5, %8 : vector<8x128xi32>
    %c0_i32_3 = arith.constant 0 : i32
    %10 = arith.cmpi slt, %3, %c0_i32_3 : i32
    %11 = vector.broadcast %10 : i1 to vector<8x128xi1>
    %12 = vector.broadcast %11 : vector<8x128xi1> to vector<8x128xi1>
    %13 = arith.xori %9, %12 : vector<8x128xi1>
    %14 = arith.andi %13, %7 : vector<8x128xi1>
    %15 = vector.broadcast %3 : i32 to vector<8x128xi32>
    %16 = arith.addi %5, %15 : vector<8x128xi32>
    %17 = arith.select %14, %16, %5 : vector<8x128xi1>, vector<8x128xi32>
    %c0_i32_4 = arith.constant 0 : i32
    %18 = vector.broadcast %c0_i32_4 : i32 to vector<8x128xi32>
    %19 = arith.cmpi eq, %17, %18 : vector<8x128xi32>
    %c15_i32 = arith.constant 15 : i32
    %20 = vector.broadcast %c15_i32 : i32 to vector<8x128xi32>
    %21 = arith.cmpi eq, %17, %20 : vector<8x128xi32>
    %c0_5 = arith.constant 0 : index
    %c0_6 = arith.constant 0 : index
    %c0_7 = arith.constant 0 : index
    %22 = vector.load %arg2[%c0_5, %c0_6, %c0_7] : memref<2x24x8xf32, #tpu.memory_space<vmem>>, vector<1x24x8xf32>
    %23 = vector.shape_cast %22 : vector<1x24x8xf32> to vector<24x8xf32>
    %cst = arith.constant dense<0.000000e+00> : vector<24x128xf32>
    %24 = tpu.matmul %23, %0, %cst {dimension_numbers = #tpu.dot_dimension_numbers<[1], [0], [0], [1], [0, 0, 1, 1], [], []>} : vector<24x8xf32>, vector<8x128xf32>, vector<24x128xf32> -> vector<24x128xf32>
    %25 = vector.extract_strided_slice %24 {offsets = [0, 0], sizes = [8, 128], strides = [1, 1]} : vector<24x128xf32> to vector<8x128xf32>
    %26 = vector.extract_strided_slice %24 {offsets = [8, 0], sizes = [8, 128], strides = [1, 1]} : vector<24x128xf32> to vector<8x128xf32>
    %27 = vector.extract_strided_slice %24 {offsets = [16, 0], sizes = [8, 128], strides = [1, 1]} : vector<24x128xf32> to vector<8x128xf32>
    %28 = vector.extract_strided_slice %25 {offsets = [0, 127], sizes = [8, 1], strides = [1, 1]} : vector<8x128xf32> to vector<8x1xf32>
    %29 = vector.extract_strided_slice %25 {offsets = [0, 0], sizes = [8, 127], strides = [1, 1]} : vector<8x128xf32> to vector<8x127xf32>
    %30 = tpu.concatenate %28, %29 in 1 : vector<8x1xf32>, vector<8x127xf32> -> vector<8x128xf32>
    %cst_8 = arith.constant 0.000000e+00 : f32
    %31 = vector.broadcast %cst_8 : f32 to vector<8x128xf32>
    %32 = arith.select %19, %31, %30 : vector<8x128xi1>, vector<8x128xf32>
    %33 = arith.addf %32, %26 : vector<8x128xf32>
    %34 = vector.extract_strided_slice %27 {offsets = [0, 1], sizes = [8, 127], strides = [1, 1]} : vector<8x128xf32> to vector<8x127xf32>
    %35 = vector.extract_strided_slice %27 {offsets = [0, 0], sizes = [8, 1], strides = [1, 1]} : vector<8x128xf32> to vector<8x1xf32>
    %36 = tpu.concatenate %34, %35 in 1 : vector<8x127xf32>, vector<8x1xf32> -> vector<8x128xf32>
    %cst_9 = arith.constant 0.000000e+00 : f32
    %37 = vector.broadcast %cst_9 : f32 to vector<8x128xf32>
    %38 = arith.select %21, %37, %36 : vector<8x128xi1>, vector<8x128xf32>
    %39 = arith.addf %33, %38 : vector<8x128xf32>
    %cst_10 = arith.constant 0.000000e+00 : f32
    %40 = vector.broadcast %cst_10 : f32 to vector<8x128xf32>
    %41 = arith.cmpf oge, %39, %40 : vector<8x128xf32>
    %cst_11 = arith.constant 0.00999999977 : f32
    %42 = vector.broadcast %cst_11 : f32 to vector<8x128xf32>
    %43 = arith.mulf %42, %39 : vector<8x128xf32>
    %44 = arith.select %41, %39, %43 : vector<8x128xi1>, vector<8x128xf32>
    %c1 = arith.constant 1 : index
    %c0_12 = arith.constant 0 : index
    %c0_13 = arith.constant 0 : index
    %45 = vector.load %arg2[%c1, %c0_12, %c0_13] : memref<2x24x8xf32, #tpu.memory_space<vmem>>, vector<1x24x8xf32>
    %46 = vector.shape_cast %45 : vector<1x24x8xf32> to vector<24x8xf32>
    %cst_14 = arith.constant dense<0.000000e+00> : vector<24x128xf32>
    %47 = tpu.matmul %46, %44, %cst_14 {dimension_numbers = #tpu.dot_dimension_numbers<[1], [0], [0], [1], [0, 0, 1, 1], [], []>} : vector<24x8xf32>, vector<8x128xf32>, vector<24x128xf32> -> vector<24x128xf32>
    %48 = vector.extract_strided_slice %47 {offsets = [0, 0], sizes = [8, 128], strides = [1, 1]} : vector<24x128xf32> to vector<8x128xf32>
    %49 = vector.extract_strided_slice %47 {offsets = [8, 0], sizes = [8, 128], strides = [1, 1]} : vector<24x128xf32> to vector<8x128xf32>
    %50 = vector.extract_strided_slice %47 {offsets = [16, 0], sizes = [8, 128], strides = [1, 1]} : vector<24x128xf32> to vector<8x128xf32>
    %51 = vector.extract_strided_slice %48 {offsets = [0, 127], sizes = [8, 1], strides = [1, 1]} : vector<8x128xf32> to vector<8x1xf32>
    %52 = vector.extract_strided_slice %48 {offsets = [0, 0], sizes = [8, 127], strides = [1, 1]} : vector<8x128xf32> to vector<8x127xf32>
    %53 = tpu.concatenate %51, %52 in 1 : vector<8x1xf32>, vector<8x127xf32> -> vector<8x128xf32>
    %cst_15 = arith.constant 0.000000e+00 : f32
    %54 = vector.broadcast %cst_15 : f32 to vector<8x128xf32>
    %55 = arith.select %19, %54, %53 : vector<8x128xi1>, vector<8x128xf32>
    %56 = arith.addf %55, %49 : vector<8x128xf32>
    %57 = vector.extract_strided_slice %50 {offsets = [0, 1], sizes = [8, 127], strides = [1, 1]} : vector<8x128xf32> to vector<8x127xf32>
    %58 = vector.extract_strided_slice %50 {offsets = [0, 0], sizes = [8, 1], strides = [1, 1]} : vector<8x128xf32> to vector<8x1xf32>
    %59 = tpu.concatenate %57, %58 in 1 : vector<8x127xf32>, vector<8x1xf32> -> vector<8x128xf32>
    %cst_16 = arith.constant 0.000000e+00 : f32
    %60 = vector.broadcast %cst_16 : f32 to vector<8x128xf32>
    %61 = arith.select %21, %60, %59 : vector<8x128xi1>, vector<8x128xf32>
    %62 = arith.addf %56, %61 : vector<8x128xf32>
    %cst_17 = arith.constant 0.000000e+00 : f32
    %63 = vector.broadcast %cst_17 : f32 to vector<8x128xf32>
    %64 = arith.cmpf oge, %62, %63 : vector<8x128xf32>
    %cst_18 = arith.constant 0.00999999977 : f32
    %65 = vector.broadcast %cst_18 : f32 to vector<8x128xf32>
    %66 = arith.mulf %65, %62 : vector<8x128xf32>
    %67 = arith.select %64, %62, %66 : vector<8x128xi1>, vector<8x128xf32>
    %68 = arith.addf %0, %67 : vector<8x128xf32>
    %c0_19 = arith.constant 0 : index
    %c0_20 = arith.constant 0 : index
    %69 = vector.load %arg3[%c0_19, %c0_20] : memref<8x128xf32, #tpu.memory_space<vmem>>, vector<8x128xf32>
    tpu.vector_store %arg3[%c0_19, %c0_20], %68 {strides = array<i32>} : memref<8x128xf32, #tpu.memory_space<vmem>>, vector<8x128xf32>,
    return
  }
  func.func @transform_0(%arg0: i32) -> (i32, i32) {
    %c0_i32 = arith.constant 0 : i32
    %c0_i32_0 = arith.constant 0 : i32
    return %c0_i32, %arg0 : i32, i32
  }
  func.func @transform_1(%arg0: i32) -> (i32, i32, i32) {
    %c0_i32 = arith.constant 0 : i32
    %c0_i32_0 = arith.constant 0 : i32
    %c0_i32_1 = arith.constant 0 : i32
    %c0_i32_2 = arith.constant 0 : i32
    return %c0_i32, %c0_i32_0, %c0_i32_1 : i32, i32, i32
  }
  func.func @transform_2(%arg0: i32) -> (i32, i32) {
    %c0_i32 = arith.constant 0 : i32
    %c0_i32_0 = arith.constant 0 : i32
    return %c0_i32, %arg0 : i32, i32
  }
}

</mosaic_0001>

<bundles_post_ra>
// kernel: tpu_custom_call.1
= control target key start
LH: loop header
LB: loop body
LE: loop exit
PB: predicated region body
PF: predicated region fallthrough
CT: control target
= control target key end

     0   :  { %7 = vsyncpa [#allocation3], 0  ;;  %s509_s0 = inlined_call_operand.hbm [shape: f32[8,128], index: 0, kind: input, shape index: {}]   ;;  %s510_s1 = inlined_call_operand.hbm [shape: f32[2,24,8], index: 1, kind: input, shape index: {}]   ;;  %s511_s2 = inlined_call_operand.hbm [shape: f32[8,128], index: 2, kind: output, shape index: {}]  }
   0x1   :  { %8 = vsyncpa [#allocation6], 0 }
   0x2   :  { %9 = vsyncpa [#allocation4], 0  ;;  %s406_s9 = smov [#allocation2]   ;;  %s407_s11 = smov [#allocation5]  }
   0x3   :  { %s16_s10 = sshll.u32 %s406_s9, 4  ;;  %s25_s12 = sshll.u32 %s407_s11, 4  ;;  %s17_s10 = int_to_ptr.vmem [resolvable:$true] %s16_s10  ;;  %s430_s12 = int_to_ptr.vmem [resolvable:$true] %s25_s12 }
   0x4   :  { %s334_s15 = scalar_lea.hbm %s509_s0, 128 }
   0x5   :  { %p335_p0 = scmp.ne.s32.totalorder %s509_s0, %s334_s15  ;;  %p338_p1 = scmp.lt.u32.totalorder %s334_s15, %s509_s0 }
   0x7   :  { %p340_p2 = pnand %p338_p1, %p335_p0 }
   0x9   :  { %343 = shalt.err (!%p340_p2)
}
   0xa   :  { %s344_s20 = scalar_lea.vmem %s17_s10, 128  ;;  %p349_p4 = scmp.lt.s32.totalorder %s17_s10, %s17_s10 }
   0xb   :  { %p345_p3 = scmp.ne.s32.totalorder %s17_s10, %s344_s20  ;;  %p350_p5 = scmp.lt.s32.totalorder %s344_s20, %s344_s20 }
   0xd   :  { %p351_p6 = por %p350_p5, %p349_p4 }
   0xf   :  { %p352_p7 = pnand %p351_p6, %p345_p3 }
  0x11   :  { %355 = shalt.err (!%p352_p7)
}
  0x12   :  { %19 = dma.hbm_to_vmem [thread:$0]  %s509_s0, 128, %s17_s10, [#allocation3]  }
  0x13   :  { %s356_s25 = scalar_lea.hbm %s510_s1, 768 }
  0x14   :  { %p357_p8 = scmp.ne.s32.totalorder %s510_s1, %s356_s25  ;;  %p360_p9 = scmp.lt.u32.totalorder %s356_s25, %s510_s1 }
  0x16   :  { %p362_p10 = pnand %p360_p9, %p357_p8 }
  0x18   :  { %365 = shalt.err (!%p362_p10)
}
  0x19   :  { %s366_s30 = scalar_lea.vmem %s430_s12, 768  ;;  %p371_p12 = scmp.lt.s32.totalorder %s430_s12, %s430_s12 }
  0x1a   :  { %p367_p11 = scmp.ne.s32.totalorder %s430_s12, %s366_s30  ;;  %p372_p13 = scmp.lt.s32.totalorder %s366_s30, %s366_s30 }
  0x1c   :  { %p373_p0 = por %p372_p13, %p371_p12 }
  0x1e   :  { %p374_p1 = pnand %p373_p0, %p367_p11 }
  0x20   :  { %377 = shalt.err (!%p374_p1)
}
  0x21   :  { %s408_s0 = smov 128   ;;  %s409_s3 = smov 8  }
  0x22   :  { %31 = dma.hbm_to_vmem [thread:$0]  %s510_s1, 768, %s430_s12, [#allocation6], %s408_s0, %s408_s0, %s409_s3  }
  0x23   :  { %400 = dma.done.wait [#allocation3], 128  }
  0x24   :  { %401 = vsyncadd [#allocation3], 4294967168 }
  0x25   :  { %402 = dma.done.wait [#allocation6], 768  }
  0x26   :  { %403 = vsyncadd [#allocation6], 4294966528  ;;  %v410_v0 = vmov 0.0   ;;  %vm411_vm0 = vmmov 0   ;;  %vm58_vm1 = vcmask 64512   ;;  %v463_v1 = vld [vmem:[#allocation2] sm:$0xff]  ;;  %v39_v11 = vlaneseq }
  0x27   :  { %303 = vmatprep.subr.mxu0 %v410_v0  ;;  %305 = vmatprep.mubr.msk.f32.mxu0 %vm411_vm0, %v410_v0  ;;  %v55_v2 = vld [vmem:[#allocation5] sm:$0xff]  ;;  %v56_v3 = vld [vmem:[#allocation5 + $0x8] sm:$0xff]  ;;  %v57_v4 = vld [vmem:[#allocation5 + $0x10] sm:$0xff]  ;;  %s412_s1 = smov 1   ;;  %s413_s6 = smov 127  }
  0x28   :  { %314 = vmatprep.subr.mxu1 %v410_v0  ;;  %316 = vmatprep.mubr.msk.f32.mxu1 %vm411_vm0, %v410_v0  ;;  %v40_v12 = vand.u32 127, %v39_v11  ;;  %v164_v23 = vld [vmem:[#allocation5 + $0x18] sm:$0xff]  ;;  %v165_v25 = vld [vmem:[#allocation5 + $0x20] sm:$0xff]  ;;  %v166_v26 = vld [vmem:[#allocation5 + $0x28] sm:$0xff]  ;;  %s414_s7 = smov [#allocation7]  }
  0x29   :  { %304 = vmatpush3.msra.mxu0 %v463_v1  ;;  %s279_s8 = sshll.u32 %s414_s7, 4  ;;  %s280_s8 = int_to_ptr.vmem [resolvable:$true] %s279_s8 }
  0x2a   :  { %306 = vmatmul.mubr.msk.f32.vlgmr.msra.gmra.mrb[0].mxu0 %vm58_vm1, %v55_v2  ;;  %v45_v13 = vand.u32 15, %v40_v12  ;;  %s378_s9 = scalar_lea.vmem %s280_s8, 128  ;;  %p383_p3 = scmp.lt.s32.totalorder %s280_s8, %s280_s8 }
  0x2b   :  { %308 = vmatprep.mubr.msk.f32.mxu0 %vm411_vm0, %v410_v0  ;;  %p379_p2 = scmp.ne.s32.totalorder %s280_s8, %s378_s9  ;;  %p384_p4 = scmp.lt.s32.totalorder %s378_s9, %s378_s9 }
  0x2c   :  { %vm473_vm2 = vcmp.eq.s32.totalorder %v45_v13, 0  ;;  %vm479_vm3 = vcmp.eq.s32.totalorder %v45_v13, 15 }
  0x2d   :  { %p385_p5 = por %p384_p4, %p383_p3 }
  0x2e   :  { %309 = vmatmul.mubr.msk.f32.gmra.mrb[2].mxu0 %vm58_vm1, %v56_v3 }
  0x2f   :  { %311 = vmatprep.mubr.msk.f32.mxu0 %vm411_vm0, %v410_v0  ;;  %p386_p6 = pnand %p385_p5, %p379_p2 }
  0x32   :  { %312 = vmatmul.mubr.msk.f32.gmra.mrb[4].mxu0 %vm58_vm1, %v57_v4 }
  0xfd   :  { %v134_v5 = vpop.f32.mrb[0].mxu0 }
  0xfe   :  { %149 = vrot.lane.b32.xlu0 %v134_v5, %s412_s1  ;;  %v307_v6 = vpop.f32.mrb[1].mxu0 }
 0x101   :  { %v139_v7 = vpop.f32.mrb[2].mxu0 }
 0x102   :  { %v310_v8 = vpop.f32.mrb[3].mxu0 }
 0x105   :  { %v144_v9 = vpop.f32.mrb[4].mxu0 }
 0x106   :  { %155 = vrot.lane.b32.xlu0 %v144_v9, %s413_s6  ;;  %v313_v10 = vpop.f32.mrb[5].mxu0 }
 0x170   :  { %v150_v15 = vpop.permute.xlu0 %149 }
 0x171   :  { %v152_v16 = vsel %vm473_vm2, 0.0, %v150_v15 }
 0x172   :  { %v153_v18 = vadd.f32 %v152_v16, %v139_v7 }
 0x178   :  { %v156_v19 = vpop.permute.xlu0 %155 }
 0x179   :  { %v158_v20 = vsel %vm479_vm3, 0.0, %v156_v19 }
 0x17a   :  { %v159_v21 = vadd.f32 %v158_v20, %v153_v18 }
 0x17c   :  { %vm160_vm4 = vcmp.ge.f32.partialorder %v159_v21, 0.0  ;;  %v161_v22 = vmul.f32 0.01, %v159_v21 }
 0x17e   :  { %v162_v24 = vsel %vm160_vm4, %v159_v21, %v161_v22 }
 0x17f   :  { %315 = vmatpush3.msra.mxu1 %v162_v24 }
 0x180   :  { %317 = vmatmul.mubr.msk.f32.vlgmr.msra.gmra.mrb[0].mxu1 %vm58_vm1, %v164_v23 }
 0x181   :  { %319 = vmatprep.mubr.msk.f32.mxu1 %vm411_vm0, %v410_v0 }
 0x184   :  { %320 = vmatmul.mubr.msk.f32.gmra.mrb[2].mxu1 %vm58_vm1, %v165_v25 }
 0x185   :  { %322 = vmatprep.mubr.msk.f32.mxu1 %vm411_vm0, %v410_v0 }
 0x188   :  { %323 = vmatmul.mubr.msk.f32.gmra.mrb[4].mxu1 %vm58_vm1, %v166_v26 }
 0x253   :  { %v242_v27 = vpop.f32.mrb[0].mxu1 }
 0x254   :  { %257 = vrot.lane.b32.xlu1 %v242_v27, %s412_s1  ;;  %v318_v28 = vpop.f32.mrb[1].mxu1 }
 0x257   :  { %v247_v29 = vpop.f32.mrb[2].mxu1 }
 0x258   :  { %v321_v30 = vpop.f32.mrb[3].mxu1 }
 0x25b   :  { %v252_v31 = vpop.f32.mrb[4].mxu1 }
 0x25c   :  { %263 = vrot.lane.b32.xlu1 %v252_v31, %s413_s6  ;;  %v324_v32 = vpop.f32.mrb[5].mxu1 }
 0x2c6   :  { %v258_v33 = vpop.permute.xlu1 %257 }
 0x2c7   :  { %v260_v34 = vsel %vm473_vm2, 0.0, %v258_v33 }
 0x2c8   :  { %v261_v35 = vadd.f32 %v260_v34, %v247_v29 }
 0x2ce   :  { %v264_v36 = vpop.permute.xlu1 %263 }
 0x2cf   :  { %v266_v37 = vsel %vm479_vm3, 0.0, %v264_v36 }
 0x2d0   :  { %v267_v38 = vadd.f32 %v266_v37, %v261_v35 }
 0x2d2   :  { %vm268_vm5 = vcmp.ge.f32.partialorder %v267_v38, 0.0  ;;  %v269_v39 = vmul.f32 0.01, %v267_v38 }
 0x2d4   :  { %v270_v40 = vsel %vm268_vm5, %v267_v38, %v269_v39 }
 0x2d5   :  { %v271_v41 = vadd.f32 %v270_v40, %v463_v1 }
 0x2d7   :  { %272 = vst [vmem:[#allocation7] sm:$0xff] %v271_v41 }
 0x2d8   :  { %389 = shalt.err (!%p386_p6)
}
 0x2d9   :  { %s390_s12 = scalar_lea.hbm %s511_s2, 128 }
 0x2da   :  { %p391_p7 = scmp.ne.s32.totalorder %s511_s2, %s390_s12  ;;  %p394_p8 = scmp.lt.u32.totalorder %s390_s12, %s511_s2 }
 0x2dc   :  { %p396_p9 = pnand %p394_p8, %p391_p7 }
 0x2de   :  { %399 = shalt.err (!%p396_p9)
}
 0x2df   :  { %282 = dma.vmem_to_hbm [thread:$0]  %s280_s8, 128, %s511_s2, [#allocation4]  }
 0x2e0   :  { %404 = dma.done.wait [#allocation4], 128  }
 0x2e1   :  { %405 = vsyncadd [#allocation4], 4294967168 }
 0x2e2   :  { %286 = vsyncpa [#allocation3], 1 }
 0x2e3   :  { %287 = vsyncpa [#allocation6], 1 }
 0x2e4   :  { %288 = vsyncpa [#allocation4], 1 }

</bundles_post_ra>
